<compile_context>
chip_gen: v5e
topology: v5e:2x2
jax: 0.10.0
libtpu: 0.0.40
codegen_flags: <defaults>
</compile_context>

<pallas_src>
import functools

import jax
import jax.numpy as jnp
from jax.experimental import pallas as pl
from jax.experimental.pallas import tpu as pltpu

_LANE = 128


def _round_up(v, m):
    return ((v + m - 1) // m) * m


def _sublane_multiple(dtype):
    # Minimum sublane tile per dtype: 8 for 32-bit, 16 for 16-bit, 32 for 8-bit.
    return max(8, 32 // jnp.dtype(dtype).itemsize)


def prepare_ffn_params(w1, b1, w2, b2):
    """One-time (init-time) lane padding of the parameters.

    w1: [in, hidden], b1: [hidden], w2: [hidden, out], b2: [out].
    Only the hidden and output feature dims are padded to multiples of 128 (lane-dense
    MXU operands / stores); the input feature dim stays unpadded because the kernel uses
    a full-extent block for it.
    """
    in_dim, hidden = w1.shape
    out_dim = w2.shape[1]
    hid_p = _round_up(hidden, _LANE)
    out_p = _round_up(out_dim, _LANE)

    w1_p = jnp.pad(w1, ((0, 0), (0, hid_p - hidden)))
    b1_p = jnp.pad(b1, (0, hid_p - hidden)).reshape(1, hid_p)
    w2_p = jnp.pad(w2, ((0, hid_p - hidden), (0, out_p - out_dim)))
    b2_p = jnp.pad(b2, (0, out_p - out_dim)).reshape(1, out_p)

    meta = dict(in_dim=in_dim, hidden=hidden, out_dim=out_dim, hid_p=hid_p, out_p=out_p)
    return (w1_p, b1_p, w2_p, b2_p), meta


def ffn_kernel(x_ref, w1_ref, b1_ref, w2_ref, b2_ref, o_ref, acc_ref, *, matmul_dtype=None):
    k = pl.program_id(1)

    @pl.when(k == 0)
    def _init():
        acc_ref[...] = jnp.zeros_like(acc_ref)

    x = x_ref[...]
    w1 = w1_ref[...]
    w2 = w2_ref[...]
    if matmul_dtype is not None:
        # bf16 (or fp8 on v7x) MXU operand path; accumulation stays f32.
        x = x.astype(matmul_dtype)
        w1 = w1.astype(matmul_dtype)
        w2 = w2.astype(matmul_dtype)

    # linear1 for this hidden-column tile: MXU matmul, f32 accumulate; bias + ReLU in f32 (VPU).
    h = jnp.dot(x, w1, preferred_element_type=jnp.float32)
    h = jnp.maximum(h + b1_ref[...].astype(jnp.float32), 0.0)
    # F.dropout with p=0 is the identity (matches the module's default dropout_rate=0).
    # TODO(synk): dropout_rate > 0 in training mode needs pltpu.prng_seed + prng_random_bits
    # per (row, hidden) tile; not implemented here.

    # linear2 partial product for this hidden tile, accumulated in the f32 scratch.
    acc_ref[...] += jnp.dot(h.astype(w2.dtype), w2, preferred_element_type=jnp.float32)

    @pl.when(k == pl.num_programs(1) - 1)
    def _finalize():
        o_ref[...] = (acc_ref[...] + b2_ref[...].astype(jnp.float32)).astype(o_ref.dtype)


def _vmem_estimate(row_tile, in_dim, hid_tile, out_p, x_item, w_item, out_item):
    """Analytic per-step VMEM budget (double-buffered inputs/outputs + scratch + h)."""
    total = 0
    total += 2 * row_tile * in_dim * x_item       # x row tile, double-buffered
    total += 2 * in_dim * hid_tile * w_item       # W1 column tile
    total += 2 * 8 * hid_tile * w_item            # b1 (sublane-padded)
    total += 2 * hid_tile * out_p * w_item        # W2 row tile
    total += 2 * 8 * out_p * w_item               # b2
    total += 2 * row_tile * out_p * out_item      # output tile, double-buffered
    total += row_tile * out_p * 4                 # f32 accumulator scratch
    total += 2 * row_tile * hid_tile * 4          # f32 intermediate h (+ temp)
    return total


def _hidden_tile_candidates(hid_p, lane=_LANE):
    """Divisors of hid_p that are multiples of `lane`, descending (hid_p is a lane multiple)."""
    cands = []
    n = 1
    while True:
        t = hid_p // n
        if hid_p % n == 0 and t % lane == 0 and t not in cands:
            cands.append(t)
        if t <= lane:
            break
        n += 1
    return cands or [hid_p]


def feed_forward_network(x, params, meta, *, row_tile=512, matmul_dtype=None,
                         vmem_budget_bytes=28 * 1024 * 1024):
    """x: [..., input_size]; params/meta from prepare_ffn_params."""
    w1_p, b1_p, w2_p, b2_p = params
    in_dim, hidden, out_dim = meta["in_dim"], meta["hidden"], meta["out_dim"]
    hid_p, out_p = meta["hid_p"], meta["out_p"]

    orig_shape = x.shape
    assert orig_shape[-1] == in_dim
    x2d = x.reshape(-1, in_dim)              # no feature/row padding of the activation
    M = x2d.shape[0]

    sublane = _sublane_multiple(x.dtype)
    row_tile = max(sublane, min(row_tile, _round_up(M, sublane)))
    row_tile = _round_up(row_tile, sublane)

    x_item = jnp.dtype(x.dtype).itemsize
    w_item = jnp.dtype(w1_p.dtype).itemsize
    out_item = x_item

    # Pick the largest hidden tile (divisor of hid_p, lane multiple) fitting the VMEM budget;
    # if even the smallest doesn't fit, shrink the row tile.
    cands = _hidden_tile_candidates(hid_p)
    hid_tile = None
    while True:
        hid_tile = next(
            (c for c in cands
             if _vmem_estimate(row_tile, in_dim, c, out_p, x_item, w_item, out_item)
             <= vmem_budget_bytes),
            None)
        if hid_tile is not None or row_tile <= sublane:
            break
        row_tile = max(sublane, (row_tile // 2 // sublane) * sublane)
    if hid_tile is None:
        hid_tile = cands[-1]

    grid = (pl.cdiv(M, row_tile), hid_p // hid_tile)

    est = _vmem_estimate(row_tile, in_dim, hid_tile, out_p, x_item, w_item, out_item)
    # 2x headroom over the analytic estimate, floored at the default scoped limit and kept
    # under v7x's 64 MiB/TC physical VMEM (but never below what we actually need).
    vmem_limit = int(min(max(2 * est, 16 << 20), 60 << 20))
    vmem_limit = max(vmem_limit, est + (2 << 20))

    # Unpadded cost estimate for XLA's scheduler.
    flops = 2 * M * (in_dim * hidden + hidden * out_dim)
    bytes_accessed = (
        M * in_dim * x_item
        + in_dim * hidden * w_item + hidden * w_item
        + hidden * out_dim * w_item + out_dim * w_item
        + M * out_dim * out_item)

    kernel = functools.partial(ffn_kernel, matmul_dtype=matmul_dtype)

    out = pl.pallas_call(
        kernel,
        out_shape=jax.ShapeDtypeStruct((M, out_p), x.dtype),
        grid_spec=pltpu.PrefetchScalarGridSpec(
            num_scalar_prefetch=0,
            grid=grid,
            in_specs=[
                # x row tile; last dim is the full (unpadded) feature extent -> no wrapper pad.
                pl.BlockSpec((row_tile, in_dim), lambda i, k: (i, 0)),
                pl.BlockSpec((in_dim, hid_tile), lambda i, k: (0, k)),   # W1 column tile
                pl.BlockSpec((1, hid_tile), lambda i, k: (0, k)),        # b1 tile
                pl.BlockSpec((hid_tile, out_p), lambda i, k: (k, 0)),    # W2 row tile
                pl.BlockSpec((1, out_p), lambda i, k: (0, 0)),           # b2 (constant block)
            ],
            out_specs=pl.BlockSpec((row_tile, out_p), lambda i, k: (i, 0)),
            scratch_shapes=[pltpu.VMEM((row_tile, out_p), jnp.float32)],
        ),
        compiler_params=pltpu.CompilerParams(
            dimension_semantics=("parallel", "arbitrary"),
            vmem_limit_bytes=vmem_limit,
        ),
        cost_estimate=pl.CostEstimate(
            flops=flops, transcendentals=0, bytes_accessed=bytes_accessed),
    )(x2d, w1_p, b1_p, w2_p, b2_p)

    if out_p != out_dim:
        out = out[:, :out_dim]
    return out.reshape(*orig_shape[:-1], out_dim)


if __name__ == "__main__":
    # Sizes consistent with the module: input_size=32, hidden_size=64, output_size=32
    batch, seq = 2, 8
    input_size, hidden_size, output_size = 32, 64, 32

    key = jax.random.PRNGKey(0)
    kx, kw1, kb1, kw2, kb2 = jax.random.split(key, 5)

    x = jax.random.normal(kx, (batch, seq, input_size), dtype=jnp.float32)

    # Deterministic parameter init (PyTorch nn.Linear-style uniform bounds), stored transposed.
    bound1 = 1.0 / (input_size ** 0.5)
    w1 = jax.random.uniform(kw1, (input_size, hidden_size), jnp.float32, -bound1, bound1)
    b1 = jax.random.uniform(kb1, (hidden_size,), jnp.float32, -bound1, bound1)
    bound2 = 1.0 / (hidden_size ** 0.5)
    w2 = jax.random.uniform(kw2, (hidden_size, output_size), jnp.float32, -bound2, bound2)
    b2 = jax.random.uniform(kb2, (output_size,), jnp.float32, -bound2, bound2)

    # One-time parameter padding (not per forward call).
    params, meta = prepare_ffn_params(w1, b1, w2, b2)

    out = feed_forward_network(x, params, meta)
    out = jax.block_until_ready(out)

    # Reference check in plain JAX
    ref = jnp.maximum(x @ w1 + b1, 0.0) @ w2 + b2
    assert out.shape == (batch, seq, output_size)
    assert jnp.allclose(out, ref, atol=1e-5, rtol=1e-5)

    print("KERNEL_OK")
</pallas_src>

<mosaic_0001>
module attributes {stable_mosaic.version = 11 : i64} {
  func.func @ffn_kernel(%arg0: i32, %arg1: i32, %arg2: memref<16x32xf32, #tpu.memory_space<vmem>>, %arg3: memref<32x128xf32, #tpu.memory_space<vmem>>, %arg4: memref<1x128xf32, #tpu.memory_space<vmem>>, %arg5: memref<128x128xf32, #tpu.memory_space<vmem>>, %arg6: memref<1x128xf32, #tpu.memory_space<vmem>>, %arg7: memref<16x128xf32, #tpu.memory_space<vmem>>, %arg8: memref<16x128xf32, #tpu.memory_space<vmem>>) attributes {dimension_semantics = [#tpu.dimension_semantics<parallel>, #tpu.dimension_semantics<arbitrary>], iteration_bounds = array<i64: 1, 1>, scalar_prefetch = 0 : i64, scratch_operands = 1 : i64, tpu.core_type = #tpu.core_type<tc>, window_params = [{transform_indices = @transform_0, window_bounds = array<i64: 16, 32>}, {transform_indices = @transform_1, window_bounds = array<i64: 32, 128>}, {transform_indices = @transform_2, window_bounds = array<i64: 1, 128>}, {transform_indices = @transform_3, window_bounds = array<i64: 128, 128>}, {pipeline_mode = #tpu.pipeline_mode<synchronous>, transform_indices = @transform_4, window_bounds = array<i64: 1, 128>}, {transform_indices = @transform_5, window_bounds = array<i64: 16, 128>}]} {
    %c0_i32 = arith.constant 0 : i32
    %0 = arith.cmpi eq, %arg1, %c0_i32 : i32
    %1 = arith.extui %0 : i1 to i32
    %c0_i32_0 = arith.constant 0 : i32
    %2 = arith.cmpi ne, %1, %c0_i32_0 : i32
    scf.if %2 {
      %cst_16 = arith.constant 0.000000e+00 : f32
      %19 = vector.broadcast %cst_16 : f32 to vector<16x128xf32>
      %c0_17 = arith.constant 0 : index
      %c0_18 = arith.constant 0 : index
      %20 = vector.load %arg8[%c0_17, %c0_18] : memref<16x128xf32, #tpu.memory_space<vmem>>, vector<16x128xf32>
      tpu.vector_store %arg8[%c0_17, %c0_18], %19 {strides = array<i32>} : memref<16x128xf32, #tpu.memory_space<vmem>>, vector<16x128xf32>,
    } else {
    }
    %c0 = arith.constant 0 : index
    %c0_1 = arith.constant 0 : index
    %3 = vector.load %arg2[%c0, %c0_1] : memref<16x32xf32, #tpu.memory_space<vmem>>, vector<16x32xf32>
    %c0_2 = arith.constant 0 : index
    %c0_3 = arith.constant 0 : index
    %4 = vector.load %arg3[%c0_2, %c0_3] : memref<32x128xf32, #tpu.memory_space<vmem>>, vector<32x128xf32>
    %c0_4 = arith.constant 0 : index
    %c0_5 = arith.constant 0 : index
    %5 = vector.load %arg5[%c0_4, %c0_5] : memref<128x128xf32, #tpu.memory_space<vmem>>, vector<128x128xf32>
    %cst = arith.constant dense<0.000000e+00> : vector<16x128xf32>
    %6 = tpu.matmul %3, %4, %cst {dimension_numbers = #tpu.dot_dimension_numbers<[1], [0], [0], [1], [0, 0, 1, 1], [], []>} : vector<16x32xf32>, vector<32x128xf32>, vector<16x128xf32> -> vector<16x128xf32>
    %c0_6 = arith.constant 0 : index
    %c0_7 = arith.constant 0 : index
    %7 = vector.load %arg4[%c0_6, %c0_7] : memref<1x128xf32, #tpu.memory_space<vmem>>, vector<1x128xf32>
    %8 = vector.broadcast %7 : vector<1x128xf32> to vector<16x128xf32>
    %9 = arith.addf %6, %8 : vector<16x128xf32>
    %cst_8 = arith.constant 0.000000e+00 : f32
    %10 = vector.broadcast %cst_8 : f32 to vector<16x128xf32>
    %11 = arith.maximumf %9, %10 : vector<16x128xf32>
    %c0_9 = arith.constant 0 : index
    %c0_10 = arith.constant 0 : index
    %12 = vector.load %arg8[%c0_9, %c0_10] : memref<16x128xf32, #tpu.memory_space<vmem>>, vector<16x128xf32>
    %cst_11 = arith.constant dense<0.000000e+00> : vector<16x128xf32>
    %13 = tpu.matmul %11, %5, %cst_11 {dimension_numbers = #tpu.dot_dimension_numbers<[1], [0], [0], [1], [0, 0, 1, 1], [], []>} : vector<16x128xf32>, vector<128x128xf32>, vector<16x128xf32> -> vector<16x128xf32>
    %14 = arith.addf %12, %13 : vector<16x128xf32>
    %c0_12 = arith.constant 0 : index
    %c0_13 = arith.constant 0 : index
    %15 = vector.load %arg8[%c0_12, %c0_13] : memref<16x128xf32, #tpu.memory_space<vmem>>, vector<16x128xf32>
    tpu.vector_store %arg8[%c0_12, %c0_13], %14 {strides = array<i32>} : memref<16x128xf32, #tpu.memory_space<vmem>>, vector<16x128xf32>,
    %c0_i32_14 = arith.constant 0 : i32
    %16 = arith.cmpi eq, %arg1, %c0_i32_14 : i32
    %17 = arith.extui %16 : i1 to i32
    %c0_i32_15 = arith.constant 0 : i32
    %18 = arith.cmpi ne, %17, %c0_i32_15 : i32
    scf.if %18 {
      %c0_16 = arith.constant 0 : index
      %c0_17 = arith.constant 0 : index
      %19 = vector.load %arg8[%c0_16, %c0_17] : memref<16x128xf32, #tpu.memory_space<vmem>>, vector<16x128xf32>
      %c0_18 = arith.constant 0 : index
      %c0_19 = arith.constant 0 : index
      %20 = vector.load %arg6[%c0_18, %c0_19] : memref<1x128xf32, #tpu.memory_space<vmem>>, vector<1x128xf32>
      %21 = vector.broadcast %20 : vector<1x128xf32> to vector<16x128xf32>
      %22 = arith.addf %19, %21 : vector<16x128xf32>
      %c0_20 = arith.constant 0 : index
      %c0_21 = arith.constant 0 : index
      %23 = vector.load %arg7[%c0_20, %c0_21] : memref<16x128xf32, #tpu.memory_space<vmem>>, vector<16x128xf32>
      tpu.vector_store %arg7[%c0_20, %c0_21], %22 {strides = array<i32>} : memref<16x128xf32, #tpu.memory_space<vmem>>, vector<16x128xf32>,
    } else {
    }
    return
  }
  func.func @transform_0(%arg0: i32, %arg1: i32) -> (i32, i32) {
    %c0_i32 = arith.constant 0 : i32
    %c0_i32_0 = arith.constant 0 : i32
    return %arg0, %c0_i32 : i32, i32
  }
  func.func @transform_1(%arg0: i32, %arg1: i32) -> (i32, i32) {
    %c0_i32 = arith.constant 0 : i32
    %c0_i32_0 = arith.constant 0 : i32
    return %c0_i32, %arg1 : i32, i32
  }
  func.func @transform_2(%arg0: i32, %arg1: i32) -> (i32, i32) {
    %c0_i32 = arith.constant 0 : i32
    %c0_i32_0 = arith.constant 0 : i32
    return %c0_i32, %arg1 : i32, i32
  }
  func.func @transform_3(%arg0: i32, %arg1: i32) -> (i32, i32) {
    %c0_i32 = arith.constant 0 : i32
    %c0_i32_0 = arith.constant 0 : i32
    return %arg1, %c0_i32 : i32, i32
  }
  func.func @transform_4(%arg0: i32, %arg1: i32) -> (i32, i32) {
    %c0_i32 = arith.constant 0 : i32
    %c0_i32_0 = arith.constant 0 : i32
    %c0_i32_1 = arith.constant 0 : i32
    return %c0_i32, %c0_i32_0 : i32, i32
  }
  func.func @transform_5(%arg0: i32, %arg1: i32) -> (i32, i32) {
    %c0_i32 = arith.constant 0 : i32
    %c0_i32_0 = arith.constant 0 : i32
    return %arg0, %c0_i32 : i32, i32
  }
}

</mosaic_0001>

<bundles_post_ra>
// kernel: tpu_custom_call.1
= control target key start
LH: loop header
LB: loop body
LE: loop exit
PB: predicated region body
PF: predicated region fallthrough
CT: control target
= control target key end

     0   :  { %10 = vsyncpa [#allocation4], 0  ;;  %s390_s0 = inlined_call_operand.hbm [shape: f32[16,32], index: 0, kind: input, shape index: {}]   ;;  %s391_s1 = inlined_call_operand.hbm [shape: f32[32,128], index: 1, kind: input, shape index: {}]   ;;  %s392_s2 = inlined_call_operand.vmem [shape: f32[1,128], index: 2, kind: input, shape index: {}]   ;;  %s393_s3 = inlined_call_operand.hbm [shape: f32[128,128], index: 3, kind: input, shape index: {}]   ;;  %s394_s4 = inlined_call_operand.vmem [shape: f32[1,128], index: 4, kind: input, shape index: {}]   ;;  %s395_s5 = inlined_call_operand.hbm [shape: f32[16,128], index: 5, kind: output, shape index: {}]  }
   0x1   :  { %11 = vsyncpa [#allocation7], 0 }
   0x2   :  { %12 = vsyncpa [#allocation5], 0  ;;  %s30_s20 = sshll.u32 %s391_s1, 4  ;;  %s322_s21 = smov [#allocation6]   ;;  %s31_s20 = int_to_ptr.hbm [resolvable:$true] %s30_s20 }
   0x3   :  { %s32_s22 = sshll.u32 %s322_s21, 4  ;;  %s17_s25 = sshll.u32 %s390_s0, 4  ;;  %s33_s22 = int_to_ptr.vmem [resolvable:$true] %s32_s22  ;;  %s18_s25 = int_to_ptr.hbm [resolvable:$true] %s17_s25 }
   0x4   :  { %s323_s26 = smov 128   ;;  %s324_s27 = smov 8  }
   0x5   :  { %38 = dma.hbm_to_vmem [thread:$0]  %s31_s20, 512, %s33_s22, [#allocation7], %s323_s26, %s323_s26, %s324_s27  }
   0x6   :  { %s325_s28 = smov [#allocation3]   ;;  %s45_s1 = sshll.u32 %s393_s3, 4  ;;  %s46_s1 = int_to_ptr.hbm [resolvable:$true] %s45_s1 }
   0x7   :  { %s19_s29 = sshll.u32 %s325_s28, 4  ;;  %s326_s0 = smov [#allocation8]   ;;  %s20_s29 = int_to_ptr.vmem [resolvable:$true] %s19_s29 }
   0x8   :  { %25 = dma.hbm_to_vmem [thread:$0]  %s18_s25, 256, %s20_s29, [#allocation4], %s323_s26, %s323_s26, %s324_s27  }
   0x9   :  { %s47_s7 = sshll.u32 %s326_s0, 4  ;;  %s48_s7 = int_to_ptr.vmem [resolvable:$true] %s47_s7 }
   0xa   :  { %53 = dma.hbm_to_vmem [thread:$0]  %s46_s1, 2048, %s48_s7, [#allocation7], %s323_s26, %s323_s26, %s324_s27  }
   0xb   :  { %316 = dma.done.wait [#allocation4], 256  }
   0xc   :  { %317 = vsyncadd [#allocation4], 4294967040 }
   0xd   :  { %318 = dma.done.wait [#allocation7], 2560  }
   0xe   :  { %319 = vsyncadd [#allocation7], 4294964736  ;;  %v79_v0 = vld [vmem:[#allocation6 + $0x18] sm:$0xff]  ;;  %v78_v1 = vld [vmem:[#allocation6 + $0x10] sm:$0xff]  ;;  %vm100_vm0 = vcmask 261120   ;;  %s327_s11 = smov [#allocation9]  }
   0xf   :  { %119 = vmatpush.msra.mxu0 %v79_v0  ;;  %v77_v2 = vld [vmem:[#allocation6 + $0x8] sm:$0xff]  ;;  %v95_v3 = vld [vmem:[#allocation8 + $0x78] sm:$0xff]  ;;  %v94_v4 = vld [vmem:[#allocation8 + $0x70] sm:$0xff]  ;;  %s178_s12 = sshll.u32 %s327_s11, 4  ;;  %s179_s12 = int_to_ptr.vmem [resolvable:$true] %s178_s12 }
  0x10   :  { %134 = vmatpush.msra.mxu1 %v95_v3  ;;  %v76_v5 = vld [vmem:[#allocation6] sm:$0xff]  ;;  %v93_v6 = vld [vmem:[#allocation8 + $0x68] sm:$0xff]  ;;  %196 = vmatpush.msra.mxu2 %v95_v3  ;;  %v74_v7 = vld [vmem:[#allocation3] sm:$0xff] }
  0x11   :  { %120 = vmatpush.msra.mxu0 %v78_v1  ;;  %v92_v8 = vld [vmem:[#allocation8 + $0x60] sm:$0xff]  ;;  %v91_v9 = vld [vmem:[#allocation8 + $0x58] sm:$0xff]  ;;  %v90_v10 = vld [vmem:[#allocation8 + $0x50] sm:$0xff] }
  0x12   :  { %135 = vmatpush.msra.mxu1 %v94_v4  ;;  %197 = vmatpush.msra.mxu2 %v94_v4  ;;  %v89_v11 = vld [vmem:[#allocation8 + $0x48] sm:$0xff]  ;;  %v75_v12 = vld [vmem:[#allocation3 + $0x8] sm:$0xff]  ;;  %v88_v13 = vld [vmem:[#allocation8 + $0x40] sm:$0xff] }
  0x13   :  { %121 = vmatpush.msra.mxu0 %v77_v2  ;;  %v87_v14 = vld [vmem:[#allocation8 + $0x38] sm:$0xff]  ;;  %v86_v15 = vld [vmem:[#allocation8 + $0x30] sm:$0xff]  ;;  %v85_v16 = vld [vmem:[#allocation8 + $0x28] sm:$0xff] }
  0x14   :  { %136 = vmatpush.msra.mxu1 %v93_v6  ;;  %198 = vmatpush.msra.mxu2 %v93_v6  ;;  %v84_v17 = vld [vmem:[#allocation8 + $0x20] sm:$0xff]  ;;  %v83_v18 = vld [vmem:[#allocation8 + $0x18] sm:$0xff]  ;;  %v82_v19 = vld [vmem:[#allocation8 + $0x10] sm:$0xff] }
  0x15   :  { %122 = vmatpush.msra.mxu0 %v76_v5  ;;  %v81_v20 = vld [vmem:[#allocation8 + $0x8] sm:$0xff]  ;;  %v80_v21 = vld [vmem:[#allocation8] sm:$0xff]  ;;  %v218_v22 = vld [vmem:[%s392_s2] ss:$0 sm:$0xff]  ;;  %s180_s2 = sshll.u32 %s395_s5, 4  ;;  %s181_s2 = int_to_ptr.hbm [resolvable:$true] %s180_s2 }
  0x16   :  { %194 = vmatmul.msk.f32.vlgmr.msra.gmra.mxu0 %vm100_vm0, %v74_v7  ;;  %137 = vmatpush.msra.mxu1 %v92_v8  ;;  %v219_v29 = vld [vmem:[%s394_s4] ss:$0 sm:$0xff] }
  0x17   :  { %199 = vmatpush.msra.mxu2 %v92_v8 }
  0x18   :  { %138 = vmatpush.msra.mxu1 %v91_v9 }
  0x19   :  { %200 = vmatpush.msra.mxu2 %v91_v9 }
  0x1a   :  { %139 = vmatpush.msra.mxu1 %v90_v10 }
  0x1b   :  { %201 = vmatpush.msra.mxu2 %v90_v10 }
  0x1c   :  { %140 = vmatpush.msra.mxu1 %v89_v11 }
  0x1d   :  { %202 = vmatpush.msra.mxu2 %v89_v11 }
  0x1e   :  { %195 = vmatmul.msk.f32.gmra.mxu0 %vm100_vm0, %v75_v12  ;;  %141 = vmatpush.msra.mxu1 %v88_v13 }
  0x1f   :  { %203 = vmatpush.msra.mxu2 %v88_v13 }
  0x20   :  { %142 = vmatpush.msra.mxu1 %v87_v14 }
  0x21   :  { %204 = vmatpush.msra.mxu2 %v87_v14 }
  0x22   :  { %143 = vmatpush.msra.mxu1 %v86_v15 }
  0x23   :  { %205 = vmatpush.msra.mxu2 %v86_v15 }
  0x24   :  { %144 = vmatpush.msra.mxu1 %v85_v16 }
  0x25   :  { %206 = vmatpush.msra.mxu2 %v85_v16 }
  0x26   :  { %145 = vmatpush.msra.mxu1 %v84_v17 }
  0x27   :  { %207 = vmatpush.msra.mxu2 %v84_v17 }
  0x28   :  { %146 = vmatpush.msra.mxu1 %v83_v18 }
  0x29   :  { %208 = vmatpush.msra.mxu2 %v83_v18 }
  0x2a   :  { %147 = vmatpush.msra.mxu1 %v82_v19 }
  0x2b   :  { %209 = vmatpush.msra.mxu2 %v82_v19 }
  0x2c   :  { %148 = vmatpush.msra.mxu1 %v81_v20 }
  0x2d   :  { %210 = vmatpush.msra.mxu2 %v81_v20 }
  0x2e   :  { %149 = vmatpush.msra.mxu1 %v80_v21 }
  0x2f   :  { %211 = vmatpush.msra.mxu2 %v80_v21 }
  0x93   :  { %v124_v23 = vpop.f32.mrf.mxu0 }
  0x94   :  { %v125_v24 = vadd.f32 %v218_v22, %v124_v23 }
  0x96   :  { %v130_v25 = vmax.f32 %v125_v24, 0.0 }
  0x98   :  { %150 = vmatmul.f32.vlgmr.msra.gmra.mxu1 %v130_v25 }
  0x9b   :  { %v127_v26 = vpop.f32.mrf.mxu0 }
  0x9c   :  { %v128_v27 = vadd.f32 %v218_v22, %v127_v26 }
  0x9e   :  { %v131_v28 = vmax.f32 %v128_v27, 0.0 }
  0xa0   :  { %153 = vmatmul.f32.vlgmr.msra.gmra.mxu2 %v131_v28 }
 0x115   :  { %v151_v30 = vpop.f32.mrf.mxu1 }
 0x116   :  { %v170_v31 = vadd.f32 %v219_v29, %v151_v30 }
 0x118   :  { %172 = vst [vmem:[#allocation9] sm:$0xff] %v170_v31 }
 0x123   :  { %v154_v32 = vpop.f32.mrf.mxu2 }
 0x124   :  { %v171_v33 = vadd.f32 %v219_v29, %v154_v32 }
 0x126   :  { %173 = vst [vmem:[#allocation9 + $0x8] sm:$0xff] %v171_v33 }
 0x127   :  { %186 = dma.vmem_to_hbm [thread:$0]  %s179_s12, 256, %s181_s2, [#allocation5], %s323_s26, %s323_s26, %s324_s27  }
 0x128   :  { %320 = dma.done.wait [#allocation5], 256  }
 0x129   :  { %321 = vsyncadd [#allocation5], 4294967040 }
 0x12a   :  { %191 = vsyncpa [#allocation4], 1 }
 0x12b   :  { %192 = vsyncpa [#allocation7], 1 }
 0x12c   :  { %193 = vsyncpa [#allocation5], 1 }

</bundles_post_ra>
